<compile_context>
chip_gen: v5e
topology: v5e:2x2
jax: 0.10.0
libtpu: 0.0.40
codegen_flags: <defaults>
</compile_context>

<pallas_src>
import jax
import jax.numpy as jnp
from jax.experimental import pallas as pl
from jax.experimental.pallas import tpu as pltpu

K_IN = 784
HIDDEN = 256
OUT_PAD = 128   # lane-dense padded width of the last matmul; the real logit is col 0


def _round_up(n, m):
    return (n + m - 1) // m * m


def _discriminator_kernel(x_ref, w1_ref, b1_ref, w2_ref, b2_ref, w3_ref, b3_ref,
                          o_ref):
    # x tile arrives as f32 straight from HBM; the bf16 cast is in-register VPU
    # work hidden under the MXU/DMA, so no wrapper-side cast pass is needed.
    x = x_ref[...].astype(jnp.bfloat16)

    # Linear(784 -> 256) + LeakyReLU(0.2); f32 accumulation on the MXU.
    h1 = jnp.dot(x, w1_ref[...], preferred_element_type=jnp.float32) + b1_ref[...]
    h1 = jnp.where(h1 > 0, h1, 0.2 * h1)

    # Linear(256 -> 256) + LeakyReLU(0.2)
    h2 = jnp.dot(h1.astype(jnp.bfloat16), w2_ref[...],
                 preferred_element_type=jnp.float32) + b2_ref[...]
    h2 = jnp.where(h2 > 0, h2, 0.2 * h2)

    # Linear(256 -> 1): keep the MXU lane-dense over 128 zero-padded columns, but
    # only the real logit (column 0) is biased, squashed, and stored to HBM.
    h3 = jnp.dot(h2.astype(jnp.bfloat16), w3_ref[...],
                 preferred_element_type=jnp.float32)
    logit = h3[:, 0:1] + b3_ref[...]
    o_ref[...] = jax.nn.sigmoid(logit).astype(o_ref.dtype)   # exp/recip on the EUP


def _prepare_params(params):
    """Cast matmul operands to bf16 once; zero-pad w3 to 128 output columns."""
    w1, b1, w2, b2, w3, b3 = params
    return (
        w1.astype(jnp.bfloat16),
        b1.reshape(1, HIDDEN).astype(jnp.float32),
        w2.astype(jnp.bfloat16),
        b2.reshape(1, HIDDEN).astype(jnp.float32),
        jnp.pad(w3, ((0, 0), (0, OUT_PAD - w3.shape[1]))).astype(jnp.bfloat16),
        b3.reshape(1, 1).astype(jnp.float32),
    )


def discriminator_forward(x, params, *, tb=None):
    """x: (B, 1, 28, 28) or (B, 784).  Returns (B, 1) float32."""
    B = x.shape[0]
    x2d = x.reshape(B, K_IN)          # == torch x.view(B, 784); no pad, no cast

    # Batch tile: aim for ~4 grid steps (megacore sharding on v7x + pipelined x
    # DMA), capped at 2048 rows so the per-step ~0.35us overhead is amortized on
    # v5e/v6e while the double-buffered f32 x tile stays well inside VMEM.
    if tb is None:
        tb = max(8, min(2048, _round_up(pl.cdiv(B, 4), 8)))
    assert tb % 8 == 0, "tb must be a multiple of 8 (f32 sublane packing)"

    grid = (pl.cdiv(B, tb),)          # last block may be partial; rows >= B are
                                      # never stored -> no batch-pad copy needed.

    w1p, b1p, w2p, b2p, w3p, b3p = _prepare_params(params)

    # Constant index_map -> Pallas keeps these VMEM-resident across batch tiles.
    def resident(a):
        return pl.BlockSpec(a.shape, lambda i: (0,) * a.ndim)

    # Scoped-VMEM budget: double-buffered f32 x tile + f32 intermediates + weights.
    # (v5e's 16 MiB default would reject tb=2048; cap below v7x's 64 MiB physical.)
    vmem_limit = int(2 * tb * K_IN * 4 + 8 * tb * HIDDEN * 4 + 2 * tb * 4
                     + 4 * (1 << 20))
    vmem_limit = max(16 * (1 << 20), min(48 * (1 << 20), vmem_limit))

    cost = pl.CostEstimate(
        flops=2 * B * (K_IN * HIDDEN + HIDDEN * HIDDEN + HIDDEN * OUT_PAD),
        transcendentals=B,
        bytes_accessed=(B * K_IN * x2d.dtype.itemsize + B * 4
                        + 2 * (K_IN * HIDDEN + HIDDEN * HIDDEN + HIDDEN * OUT_PAD)
                        + 4 * (2 * HIDDEN + 1)),
    )

    out = pl.pallas_call(
        _discriminator_kernel,
        out_shape=jax.ShapeDtypeStruct((B, 1), jnp.float32),
        grid_spec=pltpu.PrefetchScalarGridSpec(
            num_scalar_prefetch=0,
            grid=grid,
            in_specs=[
                pl.BlockSpec((tb, K_IN), lambda i: (i, 0)),   # x tile over batch
                resident(w1p), resident(b1p),
                resident(w2p), resident(b2p),
                resident(w3p), resident(b3p),
            ],
            out_specs=pl.BlockSpec((tb, 1), lambda i: (i, 0)),
        ),
        compiler_params=pltpu.CompilerParams(
            dimension_semantics=("parallel",),
            vmem_limit_bytes=vmem_limit),
        cost_estimate=cost,
    )(x2d, w1p, b1p, w2p, b2p, w3p, b3p)

    return out


def init_params(key):
    """Deterministic init matching nn.Linear default (uniform +-1/sqrt(fan_in)).
    Weights stored as (in_features, out_features); biases as (1, out_features)."""
    def linear(key, fan_in, fan_out):
        kw, kb = jax.random.split(key)
        bound = 1.0 / jnp.sqrt(fan_in)
        w = jax.random.uniform(kw, (fan_in, fan_out), jnp.float32, -bound, bound)
        b = jax.random.uniform(kb, (1, fan_out), jnp.float32, -bound, bound)
        return w, b

    k1, k2, k3 = jax.random.split(key, 3)
    w1, b1 = linear(k1, 784, 256)
    w2, b2 = linear(k2, 256, 256)
    w3, b3 = linear(k3, 256, 1)
    return (w1, b1, w2, b2, w3, b3)


def _reference_forward(x, params):
    """Pure-JAX f32 reference for a sanity check."""
    w1, b1, w2, b2, w3, b3 = params
    h = x.reshape(x.shape[0], 784)
    h = h @ w1 + b1
    h = jnp.where(h > 0, h, 0.2 * h)
    h = h @ w2 + b2
    h = jnp.where(h > 0, h, 0.2 * h)
    h = h @ w3 + b3
    return jax.nn.sigmoid(h)


if __name__ == "__main__":
    key = jax.random.PRNGKey(0)
    kx, kp = jax.random.split(key)

    B = 64   # exercises a multi-step grid (tb=16 -> 4 "parallel" steps)
    x = jax.random.normal(kx, (B, 1, 28, 28), jnp.float32)   # NCHW, flattens to 784
    params = init_params(kp)

    out = discriminator_forward(x, params)
    out = jax.block_until_ready(out)

    ref = _reference_forward(x, params)
    assert out.shape == (B, 1)
    # bf16 matmul operands -> compare against the f32 reference with a looser tol.
    assert jnp.allclose(out, ref, atol=2e-2, rtol=2e-2)

    print("KERNEL_OK")
</pallas_src>

<mosaic_0001>
module attributes {stable_mosaic.version = 11 : i64} {
  func.func @_discriminator_kernel(%arg0: i32, %arg1: memref<16x784xf32, #tpu.memory_space<vmem>>, %arg2: memref<784x256xbf16, #tpu.memory_space<vmem>>, %arg3: memref<1x256xf32, #tpu.memory_space<vmem>>, %arg4: memref<256x256xbf16, #tpu.memory_space<vmem>>, %arg5: memref<1x256xf32, #tpu.memory_space<vmem>>, %arg6: memref<256x128xbf16, #tpu.memory_space<vmem>>, %arg7: memref<1x1xf32, #tpu.memory_space<vmem>>, %arg8: memref<16x1xf32, #tpu.memory_space<vmem>>) attributes {dimension_semantics = [#tpu.dimension_semantics<parallel>], iteration_bounds = array<i64: 4>, scalar_prefetch = 0 : i64, scratch_operands = 0 : i64, tpu.core_type = #tpu.core_type<tc>, window_params = [{transform_indices = @transform_0, window_bounds = array<i64: 16, 784>}, {pipeline_mode = #tpu.pipeline_mode<synchronous>, transform_indices = @transform_1, window_bounds = array<i64: 784, 256>}, {pipeline_mode = #tpu.pipeline_mode<synchronous>, transform_indices = @transform_2, window_bounds = array<i64: 1, 256>}, {pipeline_mode = #tpu.pipeline_mode<synchronous>, transform_indices = @transform_3, window_bounds = array<i64: 256, 256>}, {pipeline_mode = #tpu.pipeline_mode<synchronous>, transform_indices = @transform_4, window_bounds = array<i64: 1, 256>}, {pipeline_mode = #tpu.pipeline_mode<synchronous>, transform_indices = @transform_5, window_bounds = array<i64: 256, 128>}, {pipeline_mode = #tpu.pipeline_mode<synchronous>, transform_indices = @transform_6, window_bounds = array<i64: 1, 1>}, {transform_indices = @transform_7, window_bounds = array<i64: 16, 1>}]} {
    %c0 = arith.constant 0 : index
    %c0_0 = arith.constant 0 : index
    %0 = vector.load %arg1[%c0, %c0_0] : memref<16x784xf32, #tpu.memory_space<vmem>>, vector<16x784xf32>
    %1 = arith.truncf %0 : vector<16x784xf32> to vector<16x784xbf16>
    %c0_1 = arith.constant 0 : index
    %c0_2 = arith.constant 0 : index
    %2 = vector.load %arg2[%c0_1, %c0_2] : memref<784x256xbf16, #tpu.memory_space<vmem>>, vector<784x256xbf16>
    %cst = arith.constant dense<0.000000e+00> : vector<16x256xf32>
    %3 = tpu.matmul %1, %2, %cst {dimension_numbers = #tpu.dot_dimension_numbers<[1], [0], [0], [1], [0, 0, 1, 1], [], []>} : vector<16x784xbf16>, vector<784x256xbf16>, vector<16x256xf32> -> vector<16x256xf32>
    %c0_3 = arith.constant 0 : index
    %c0_4 = arith.constant 0 : index
    %4 = vector.load %arg3[%c0_3, %c0_4] : memref<1x256xf32, #tpu.memory_space<vmem>>, vector<1x256xf32>
    %5 = vector.broadcast %4 : vector<1x256xf32> to vector<16x256xf32>
    %6 = arith.addf %3, %5 : vector<16x256xf32>
    %cst_5 = arith.constant 0.000000e+00 : f32
    %7 = vector.broadcast %cst_5 : f32 to vector<16x256xf32>
    %8 = arith.cmpf ogt, %6, %7 : vector<16x256xf32>
    %cst_6 = arith.constant 2.000000e-01 : f32
    %9 = vector.broadcast %cst_6 : f32 to vector<16x256xf32>
    %10 = arith.mulf %9, %6 : vector<16x256xf32>
    %11 = arith.select %8, %6, %10 : vector<16x256xi1>, vector<16x256xf32>
    %12 = arith.truncf %11 : vector<16x256xf32> to vector<16x256xbf16>
    %c0_7 = arith.constant 0 : index
    %c0_8 = arith.constant 0 : index
    %13 = vector.load %arg4[%c0_7, %c0_8] : memref<256x256xbf16, #tpu.memory_space<vmem>>, vector<256x256xbf16>
    %cst_9 = arith.constant dense<0.000000e+00> : vector<16x256xf32>
    %14 = tpu.matmul %12, %13, %cst_9 {dimension_numbers = #tpu.dot_dimension_numbers<[1], [0], [0], [1], [0, 0, 1, 1], [], []>} : vector<16x256xbf16>, vector<256x256xbf16>, vector<16x256xf32> -> vector<16x256xf32>
    %c0_10 = arith.constant 0 : index
    %c0_11 = arith.constant 0 : index
    %15 = vector.load %arg5[%c0_10, %c0_11] : memref<1x256xf32, #tpu.memory_space<vmem>>, vector<1x256xf32>
    %16 = vector.broadcast %15 : vector<1x256xf32> to vector<16x256xf32>
    %17 = arith.addf %14, %16 : vector<16x256xf32>
    %cst_12 = arith.constant 0.000000e+00 : f32
    %18 = vector.broadcast %cst_12 : f32 to vector<16x256xf32>
    %19 = arith.cmpf ogt, %17, %18 : vector<16x256xf32>
    %cst_13 = arith.constant 2.000000e-01 : f32
    %20 = vector.broadcast %cst_13 : f32 to vector<16x256xf32>
    %21 = arith.mulf %20, %17 : vector<16x256xf32>
    %22 = arith.select %19, %17, %21 : vector<16x256xi1>, vector<16x256xf32>
    %23 = arith.truncf %22 : vector<16x256xf32> to vector<16x256xbf16>
    %c0_14 = arith.constant 0 : index
    %c0_15 = arith.constant 0 : index
    %24 = vector.load %arg6[%c0_14, %c0_15] : memref<256x128xbf16, #tpu.memory_space<vmem>>, vector<256x128xbf16>
    %cst_16 = arith.constant dense<0.000000e+00> : vector<16x128xf32>
    %25 = tpu.matmul %23, %24, %cst_16 {dimension_numbers = #tpu.dot_dimension_numbers<[1], [0], [0], [1], [0, 0, 1, 1], [], []>} : vector<16x256xbf16>, vector<256x128xbf16>, vector<16x128xf32> -> vector<16x128xf32>
    %26 = vector.extract_strided_slice %25 {offsets = [0, 0], sizes = [16, 1], strides = [1, 1]} : vector<16x128xf32> to vector<16x1xf32>
    %c0_17 = arith.constant 0 : index
    %c0_18 = arith.constant 0 : index
    %27 = vector.load %arg7[%c0_17, %c0_18] : memref<1x1xf32, #tpu.memory_space<vmem>>, vector<1x1xf32>
    %28 = vector.broadcast %27 : vector<1x1xf32> to vector<16x1xf32>
    %29 = arith.addf %26, %28 : vector<16x1xf32>
    %30 = arith.negf %29 : vector<16x1xf32>
    %31 = math.exp %30 : vector<16x1xf32>
    %cst_19 = arith.constant 1.000000e+00 : f32
    %32 = vector.broadcast %cst_19 : f32 to vector<16x1xf32>
    %33 = arith.addf %32, %31 : vector<16x1xf32>
    %34 = arith.divf %32, %33 : vector<16x1xf32>
    %c0_20 = arith.constant 0 : index
    %c0_21 = arith.constant 0 : index
    %35 = vector.load %arg8[%c0_20, %c0_21] : memref<16x1xf32, #tpu.memory_space<vmem>>, vector<16x1xf32>
    tpu.vector_store %arg8[%c0_20, %c0_21], %34 {strides = array<i32>} : memref<16x1xf32, #tpu.memory_space<vmem>>, vector<16x1xf32>,
    return
  }
  func.func @transform_0(%arg0: i32) -> (i32, i32) {
    %c0_i32 = arith.constant 0 : i32
    %c0_i32_0 = arith.constant 0 : i32
    return %arg0, %c0_i32 : i32, i32
  }
  func.func @transform_1(%arg0: i32) -> (i32, i32) {
    %c0_i32 = arith.constant 0 : i32
    %c0_i32_0 = arith.constant 0 : i32
    %c0_i32_1 = arith.constant 0 : i32
    return %c0_i32, %c0_i32_0 : i32, i32
  }
  func.func @transform_2(%arg0: i32) -> (i32, i32) {
    %c0_i32 = arith.constant 0 : i32
    %c0_i32_0 = arith.constant 0 : i32
    %c0_i32_1 = arith.constant 0 : i32
    return %c0_i32, %c0_i32_0 : i32, i32
  }
  func.func @transform_3(%arg0: i32) -> (i32, i32) {
    %c0_i32 = arith.constant 0 : i32
    %c0_i32_0 = arith.constant 0 : i32
    %c0_i32_1 = arith.constant 0 : i32
    return %c0_i32, %c0_i32_0 : i32, i32
  }
  func.func @transform_4(%arg0: i32) -> (i32, i32) {
    %c0_i32 = arith.constant 0 : i32
    %c0_i32_0 = arith.constant 0 : i32
    %c0_i32_1 = arith.constant 0 : i32
    return %c0_i32, %c0_i32_0 : i32, i32
  }
  func.func @transform_5(%arg0: i32) -> (i32, i32) {
    %c0_i32 = arith.constant 0 : i32
    %c0_i32_0 = arith.constant 0 : i32
    %c0_i32_1 = arith.constant 0 : i32
    return %c0_i32, %c0_i32_0 : i32, i32
  }
  func.func @transform_6(%arg0: i32) -> (i32, i32) {
    %c0_i32 = arith.constant 0 : i32
    %c0_i32_0 = arith.constant 0 : i32
    %c0_i32_1 = arith.constant 0 : i32
    return %c0_i32, %c0_i32_0 : i32, i32
  }
  func.func @transform_7(%arg0: i32) -> (i32, i32) {
    %c0_i32 = arith.constant 0 : i32
    %c0_i32_0 = arith.constant 0 : i32
    return %arg0, %c0_i32 : i32, i32
  }
}

</mosaic_0001>

<bundles_post_ra>
// kernel: tpu_custom_call.1
= control target key start
LH: loop header
LB: loop body
LE: loop exit
PB: predicated region body
PF: predicated region fallthrough
CT: control target
= control target key end

     0   :  { %s2993_s0 = inlined_call_operand.hbm [shape: f32[64,784], index: 0, kind: input, shape index: {}]   ;;  %s2994_s1 = inlined_call_operand.hbm [shape: bf16[784,256], index: 1, kind: input, shape index: {}]   ;;  %s2995_s2 = inlined_call_operand.vmem [shape: f32[1,256], index: 2, kind: input, shape index: {}]   ;;  %s2996_s3 = inlined_call_operand.hbm [shape: bf16[256,256], index: 3, kind: input, shape index: {}]   ;;  %s2997_s4 = inlined_call_operand.vmem [shape: f32[1,256], index: 4, kind: input, shape index: {}]   ;;  %s2998_s5 = inlined_call_operand.hbm [shape: bf16[256,128], index: 5, kind: input, shape index: {}]   ;;  %s2999_s6 = inlined_call_operand.<no memory space> [shape: f32[1,1], index: 6, kind: input, shape index: {}]   ;;  %s3000_s7 = inlined_call_operand.vmem [shape: f32[64,1], index: 7, kind: output, shape index: {}]  }
   0x1   :  { %v12_v0 = vstv %s2999_s6 }
   0x2   :  { %13 = vst [vmem:[#allocation2] sm:$0x1] %v12_v0 }
   0x3   :  { %14 = vsyncpa [#allocation4], 0 }
   0x4   :  { %16 = vsyncpa [#allocation4 + $0x1], 0 }
   0x5   :  { %17 = vsyncpa [#allocation6], 0 }
   0x6   :  { %18 = vsyncpa [#allocation9], 0  ;;  %s2809_s26 = smov 0   ;;  %s2811_s27 = smov 0  }
   0x7   :  { %s2813_s28 = smov 0   ;;  %s2815_s29 = smov 0  }
   0x8 LB: > { %s1753_s6 = sadd.s32 4294967295, %s2755_s29   ;;  %p44_p0 = scmp.ne.s32.totalorder %s2747_s27, %s2743_s26  ;;  %s2755_s29 = sphi %s2815_s29, %s3009_s29   ;;  %s2751_s28 = sphi %s2813_s28, %s3008_s28   ;;  %s2747_s27 = sphi %s2811_s27, %s3007_s27   ;;  %s2743_s26 = sphi %s2809_s26, %s3006_s26  }
   0x9   : > { %p2831_p1 = scmp.eq.s32.totalorder %s1753_s6, 0  ;;  %p1755_p2 = scmp.ge.s32.totalorder %s2755_s29, 1 }
   0xa   : > { %p207_p3 = scmp.lt.s32.totalorder %s2755_s29, 5  ;;  %s218_s11 = sshll.u32 %s2994_s1, 4  ;;  %s219_s11 = int_to_ptr.hbm [resolvable:$true] %s218_s11 }
   0xb   : > { %p2839_p4 = por %p2831_p1, %p44_p0  ;;  %s2757_s13 = smov [#allocation5]  }
   0xc   : > { %p2846_p5 = pnand %p1755_p2, %p207_p3  ;;  %s220_s14 = sshll.u32 %s2757_s13, 4  ;;  %s221_s14 = int_to_ptr.vmem [resolvable:$true] %s220_s14 }
   0xd   : > { %s235_s18 = sshll.u32 %s2996_s3, 4  ;;  %s2758_s19 = smov 128   ;;  %s236_s18 = int_to_ptr.hbm [resolvable:$true] %s235_s18 }
   0xe   : > { %p2522_p6 = pneg %p2846_p5  ;;  %s2759_s20 = smov 8  }
   0xf   : > { %s2760_s21 = smov [#allocation7]   ;;  %s252_s25 = sshll.u32 %s2998_s5, 4  ;;  %s253_s25 = int_to_ptr.hbm [resolvable:$true] %s252_s25 }
  0x10   : > { %p2854_p7 = pnand %p2522_p6, %p2831_p1  ;;  %s237_s22 = sshll.u32 %s2760_s21, 4  ;;  %s238_s22 = int_to_ptr.vmem [resolvable:$true] %s237_s22 }
  0x11   : > { %s2761_s26 = smov [#allocation8]   ;;  %s2762_s10 = smov 64  }
  0x12   : > { %2525 = dma.hbm_to_vmem [thread:$0]  (!%p2854_p7), %s219_s11, 12544, %s221_s14, [#allocation6], %s2758_s19, %s2758_s19, %s2759_s20  }
  0x13   : > { %2528 = dma.hbm_to_vmem [thread:$0]  (!%p2854_p7), %s236_s18, 4096, %s238_s22, [#allocation6], %s2758_s19, %s2758_s19, %s2759_s20  }
  0x14   : > { %s254_s9 = sshll.u32 %s2761_s26, 4  ;;  %s2763_s11 = smov 4   ;;  %s255_s9 = int_to_ptr.vmem [resolvable:$true] %s254_s9 }
  0x15   : > { %2531 = dma.hbm_to_vmem [thread:$0]  (!%p2854_p7), %s253_s25, 2048, %s255_s9, [#allocation9], %s2762_s10, %s2762_s10, %s2763_s11  }
  0x16   : > { %s2871_s13 = sadd.s32 1, %s2755_s29   ;;  %s31_s16 = sadd.s32 1, %s2751_s28 }
  0x17   : > { %s28_s14 = ssub.s32 %s2755_s29, %s2871_s13  ;;  %p38_p9 = scmp.ne.s32.totalorder %s2751_s28, %s2747_s27 }
  0x18   : > { %p29_p8 = scmp.eq.s32.totalorder %s28_s14, 0  ;;  %p39_p10 = scmp.eq.s32.totalorder %s2755_s29, 0 }
  0x19   : > { %p2539_p11 = scmp.lt.s32.totalorder %s2755_s29, 4  ;;  %s271_s18 = sand.u32 1, %s2751_s28  }
  0x1a   : > { %s2881_s17 = scalar_select %p29_p8, %s2751_s28, %s31_s16  }
  0x1b   : > { %p40_p12 = por %p39_p10, %p38_p9  ;;  %s2505_s19 = smul.u32 112, %s271_s18 }
  0x1c   : > { %s2506_s20 = smul.u32 112, %s2755_s29  ;;  %s272_s9 = scalar_lea.sflag [#allocation4], %s271_s18 }
  0x1d   : > { %p2885_p13 = pnand %p2539_p11, %p40_p12  ;;  %s275_s24 = scalar_lea.vmem [#allocation3], %s2505_s19 }
  0x1e   : > { %s281_s23 = scalar_lea.hbm %s2993_s0, %s2506_s20  ;;  %s284_s25 = sshll.u32 %s275_s24, 4  ;;  %s285_s25 = int_to_ptr.vmem [resolvable:$true] %s284_s25 }
  0x1f   : > { %s282_s26 = sshll.u32 %s281_s23, 4  ;;  %p2687_p2 = pneg %p2885_p13  ;;  %s283_s26 = int_to_ptr.hbm [resolvable:$true] %s282_s26 }
  0x20   : > { %s2683_s10 = sshra.s32 %s283_s26, 4  ;;  %s2690_s15 = scalar_lea.hbm %s2993_s0, 448  ;;  %s2684_s10 = int_to_ptr.hbm [resolvable:$true] %s2683_s10 }
  0x21   : > { %s2685_s11 = scalar_lea.hbm %s2684_s10, 112  ;;  %p2691_p7 = scmp.lt.s32.totalorder %s2684_s10, %s2993_s0 }
  0x22   : > { %p2686_p0 = scmp.ne.s32.totalorder %s2684_s10, %s2685_s11  ;;  %p2692_p8 = scmp.lt.s32.totalorder %s2690_s15, %s2685_s11 }
  0x24   : > { %p2688_p3 = pnand %p2687_p2, %p2686_p0  ;;  %p2693_p9 = por %p2692_p8, %p2691_p7 }
  0x26   : > { %p2689_p6 = pneg %p2688_p3 }
  0x28   : > { %p2694_p10 = pnand %p2693_p9, %p2689_p6 }
  0x2a   : > { %2697 = shalt.err (!%p2694_p10)
}
  0x2b   : > { %s2764_s18 = smov 896   ;;  %s2765_s19 = smov 56  }
  0x2c   : > { %2535 = dma.hbm_to_vmem [thread:$0]  (!%p2885_p13), %s283_s26, 1792, %s285_s25, %s272_s9, %s2764_s18, %s2764_s18, %s2765_s19  }
  0x2d   : > { %296 = sbr.rel (%p2846_p5) target bundleno = 630 (0x276), region = 48  ;;  %s298_s23 = sand.u32 (!%p2846_p5), 1, %s2747_s27  }
  0x2e   : > { %s2507_s24 = smul.u32 (!%p2846_p5), 112, %s298_s23  ;;  %s299_s14 = scalar_lea.sflag (!%p2846_p5), [#allocation4], %s298_s23 }
  0x30   : > { %s2905_s16 = scalar_lea.vmem (!%p2846_p5), [#allocation3], %s2507_s24 }
  0x32   : > { %2730 = dma.done.wait (%p2839_p4), %s299_s14, 1792  }
  0x33   : > { %2732 = vsyncadd (%p2839_p4), %s299_s14, 4294965504 }
  0x34   : > { %2734 = dma.done.wait (%p2831_p1), [#allocation6], 16640  }
  0x35   : > { %2736 = vsyncadd (%p2831_p1), [#allocation6], 4294950656 }
  0x36   : > { %2738 = dma.done.wait (%p2831_p1), [#allocation9], 2048  }
  0x37   : > { %2740 = vsyncadd (%p2831_p1), [#allocation9], 4294965248  ;;  %v1827_v1 = vld [vmem:[#allocation5 + $0x70] sm:$0xf]  ;;  %v2374_v2 = vld [vmem:[#allocation5 + $0x74] sm:$0xf0] }
  0x38   : > { %v1955_v3 = vld [vmem:[#allocation5 + $0x170] sm:$0xf]  ;;  %v1828_v4 = vor.u32 %v2374_v2, %v1827_v1  ;;  %v2406_v5 = vld [vmem:[#allocation5 + $0x174] sm:$0xf0]  ;;  %v1819_v12 = vld [vmem:[#allocation5 + $0x60] sm:$0xf] }
  0x39   : > { %v2019_v6 = vld [vmem:[#allocation5 + $0x1f0] sm:$0xf]  ;;  %v2422_v7 = vld [vmem:[#allocation5 + $0x1f4] sm:$0xf0]  ;;  %v1956_v8 = vor.u32 %v2406_v5, %v1955_v3  ;;  %v2372_v14 = vld [vmem:[#allocation5 + $0x64] sm:$0xf0] }
  0x3a   : > { %v2020_v9 = vor.u32 %v2422_v7, %v2019_v6  ;;  %v1891_v10 = vld [vmem:[#allocation5 + $0xf0] sm:$0xf]  ;;  %v2390_v11 = vld [vmem:[#allocation5 + $0xf4] sm:$0xf0]  ;;  %976 = vmatpush.bf16.msra.mxu0 %v1828_v4  ;;  %v1947_v15 = vld [vmem:[#allocation5 + $0x160] sm:$0xf]  ;;  %v1820_v17 = vor.u32 %v2372_v14, %v1819_v12 }
  0x3b   : > { %v1892_v13 = vor.u32 %v2390_v11, %v1891_v10  ;;  %v2404_v16 = vld [vmem:[#allocation5 + $0x164] sm:$0xf0]  ;;  %1004 = vmatpush.bf16.msra.mxu2 %v1956_v8  ;;  %v2011_v19 = vld [vmem:[#allocation5 + $0x1e0] sm:$0xf]  ;;  %v1811_v24 = vld [vmem:[#allocation5 + $0x50] sm:$0xf] }
  0x3c   : > { %1018 = vmatpush.bf16.msra.mxu3 %v2020_v9  ;;  %v1948_v18 = vor.u32 %v2404_v16, %v1947_v15  ;;  %v2420_v20 = vld [vmem:[#allocation5 + $0x1e4] sm:$0xf0]  ;;  %v1883_v21 = vld [vmem:[#allocation5 + $0xe0] sm:$0xf]  ;;  %v2370_v25 = vld [vmem:[#allocation5 + $0x54] sm:$0xf0] }
  0x3d   : > { %990 = vmatpush.bf16.msra.mxu1 %v1892_v13  ;;  %v2012_v22 = vor.u32 %v2420_v20, %v2011_v19  ;;  %v2388_v23 = vld [vmem:[#allocation5 + $0xe4] sm:$0xf0]  ;;  %v1939_v27 = vld [vmem:[#allocation5 + $0x150] sm:$0xf]  ;;  %v2402_v28 = vld [vmem:[#allocation5 + $0x154] sm:$0xf0]  ;;  %v1812_v30 = vor.u32 %v2370_v25, %v1811_v24 }
  0x3e   : > { %v1884_v26 = vor.u32 %v2388_v23, %v1883_v21  ;;  %v2003_v29 = vld [vmem:[#allocation5 + $0x1d0] sm:$0xf]  ;;  %977 = vmatpush.bf16.msra.mxu0 %v1820_v17  ;;  %v2418_v31 = vld [vmem:[#allocation5 + $0x1d4] sm:$0xf0]  ;;  %v1940_v34 = vor.u32 %v2402_v28, %v1939_v27  ;;  %v1803_v36 = vld [vmem:[#allocation5 + $0x40] sm:$0xf] }
  0x3f   : > { %v1875_v32 = vld [vmem:[#allocation5 + $0xd0] sm:$0xf]  ;;  %v2386_v33 = vld [vmem:[#allocation5 + $0xd4] sm:$0xf0]  ;;  %1005 = vmatpush.bf16.msra.mxu2 %v1948_v18  ;;  %v2004_v35 = vor.u32 %v2418_v31, %v2003_v29  ;;  %v2368_v37 = vld [vmem:[#allocation5 + $0x44] sm:$0xf0] }
  0x40   : > { %1019 = vmatpush.bf16.msra.mxu3 %v2012_v22  ;;  %v1931_v38 = vld [vmem:[#allocation5 + $0x140] sm:$0xf]  ;;  %v1876_v39 = vor.u32 %v2386_v33, %v1875_v32  ;;  %v2400_v40 = vld [vmem:[#allocation5 + $0x144] sm:$0xf0]  ;;  %v1804_v45 = vor.u32 %v2368_v37, %v1803_v36  ;;  %v1795_v48 = vld [vmem:[#allocation5 + $0x30] sm:$0xf] }
  0x41   : > { %991 = vmatpush.bf16.msra.mxu1 %v1884_v26  ;;  %v1995_v41 = vld [vmem:[#allocation5 + $0x1c0] sm:$0xf]  ;;  %v2416_v42 = vld [vmem:[#allocation5 + $0x1c4] sm:$0xf0]  ;;  %v1932_v46 = vor.u32 %v2400_v40, %v1931_v38  ;;  %v2366_v49 = vld [vmem:[#allocation5 + $0x34] sm:$0xf0] }
  0x42   : > { %v1867_v43 = vld [vmem:[#allocation5 + $0xc0] sm:$0xf]  ;;  %v2384_v44 = vld [vmem:[#allocation5 + $0xc4] sm:$0xf0]  ;;  %978 = vmatpush.bf16.msra.mxu0 %v1812_v30  ;;  %v1996_v47 = vor.u32 %v2416_v42, %v1995_v41  ;;  %v1923_v50 = vld [vmem:[#allocation5 + $0x130] sm:$0xf]  ;;  %v1796_v57 = vor.u32 %v2366_v49, %v1795_v48 }
  0x43   : > { %1006 = vmatpush.bf16.msra.mxu2 %v1940_v34  ;;  %v1868_v51 = vor.u32 %v2384_v44, %v1867_v43  ;;  %v2398_v52 = vld [vmem:[#allocation5 + $0x134] sm:$0xf0]  ;;  %v1987_v53 = vld [vmem:[#allocation5 + $0x1b0] sm:$0xf]  ;;  %v1787_v60 = vld [vmem:[#allocation5 + $0x20] sm:$0xf] }
  0x44   : > { %1020 = vmatpush.bf16.msra.mxu3 %v2004_v35  ;;  %v2414_v54 = vld [vmem:[#allocation5 + $0x1b4] sm:$0xf0]  ;;  %v1859_v55 = vld [vmem:[#allocation5 + $0xb0] sm:$0xf]  ;;  %v1924_v58 = vor.u32 %v2398_v52, %v1923_v50  ;;  %v2364_v61 = vld [vmem:[#allocation5 + $0x24] sm:$0xf0] }
  0x45   : > { %992 = vmatpush.bf16.msra.mxu1 %v1876_v39  ;;  %v2382_v56 = vld [vmem:[#allocation5 + $0xb4] sm:$0xf0]  ;;  %v1988_v59 = vor.u32 %v2414_v54, %v1987_v53  ;;  %v1915_v62 = vld [vmem:[#allocation5 + $0x120] sm:$0xf]  ;;  %v2396_v0 = vld [vmem:[#allocation5 + $0x124] sm:$0xf0]  ;;  %v1788_v5 = vor.u32 %v2364_v61, %v1787_v60 }
  0x46   : > { %979 = vmatpush.bf16.msra.mxu0 %v1804_v45  ;;  %v1860_v63 = vor.u32 %v2382_v56, %v1859_v55  ;;  %v1979_v1 = vld [vmem:[#allocation5 + $0x1a0] sm:$0xf]  ;;  %v2412_v2 = vld [vmem:[#allocation5 + $0x1a4] sm:$0xf0]  ;;  %v1779_v6 = vld [vmem:[#allocation5 + $0x10] sm:$0xf]  ;;  %v1916_v7 = vor.u32 %v2396_v0, %v1915_v62 }
  0x47   : > { %1007 = vmatpush.bf16.msra.mxu2 %v1932_v46  ;;  %v1851_v3 = vld [vmem:[#allocation5 + $0xa0] sm:$0xf]  ;;  %v2380_v4 = vld [vmem:[#allocation5 + $0xa4] sm:$0xf0]  ;;  %v1980_v8 = vor.u32 %v2412_v2, %v1979_v1  ;;  %v2362_v9 = vld [vmem:[#allocation5 + $0x14] sm:$0xf0] }
  0x48   : > { %1021 = vmatpush.bf16.msra.mxu3 %v1996_v47  ;;  %v1907_v10 = vld [vmem:[#allocation5 + $0x110] sm:$0xf]  ;;  %v2394_v11 = vld [vmem:[#allocation5 + $0x114] sm:$0xf0]  ;;  %v1852_v12 = vor.u32 %v2380_v4, %v1851_v3  ;;  %v1771_v17 = vld [vmem:[#allocation5] sm:$0xf]  ;;  %v1780_v19 = vor.u32 %v2362_v9, %v1779_v6 }
  0x49   : > { %993 = vmatpush.bf16.msra.mxu1 %v1868_v51  ;;  %v1971_v13 = vld [vmem:[#allocation5 + $0x190] sm:$0xf]  ;;  %v2410_v14 = vld [vmem:[#allocation5 + $0x194] sm:$0xf0]  ;;  %v2360_v18 = vld [vmem:[#allocation5 + $0x4] sm:$0xf0]  ;;  %v1908_v24 = vor.u32 %v2394_v11, %v1907_v10 }
  0x4a   : > { %980 = vmatpush.bf16.msra.mxu0 %v1796_v57  ;;  %v1843_v15 = vld [vmem:[#allocation5 + $0x90] sm:$0xf]  ;;  %v2378_v16 = vld [vmem:[#allocation5 + $0x94] sm:$0xf0]  ;;  %v1899_v20 = vld [vmem:[#allocation5 + $0x100] sm:$0xf]  ;;  %v1972_v25 = vor.u32 %v2410_v14, %v1971_v13  ;;  %v1772_v36 = vor.u32 %v2360_v18, %v1771_v17 }
  0x4b   : > { %1008 = vmatpush.bf16.msra.mxu2 %v1924_v58  ;;  %v2392_v21 = vld [vmem:[#allocation5 + $0x104] sm:$0xf0]  ;;  %v1963_v22 = vld [vmem:[#allocation5 + $0x180] sm:$0xf]  ;;  %v2083_v26 = vld [vmem:[#allocation5 + $0x270] sm:$0xf]  ;;  %v1844_v29 = vor.u32 %v2378_v16, %v1843_v15 }
  0x4c   : > { %1022 = vmatpush.bf16.msra.mxu3 %v1988_v59  ;;  %v2408_v23 = vld [vmem:[#allocation5 + $0x184] sm:$0xf0]  ;;  %v2438_v27 = vld [vmem:[#allocation5 + $0x274] sm:$0xf0]  ;;  %v2373_v28 = vld [vmem:[#allocation5 + $0x74] sm:$0xf]  ;;  %v1900_v40 = vor.u32 %v2392_v21, %v1899_v20 }
  0x4d   : > { %994 = vmatpush.bf16.msra.mxu1 %v1860_v63  ;;  %v1829_v30 = vld [vmem:[#allocation5 + $0x78] sm:$0xf0]  ;;  %v1835_v31 = vld [vmem:[#allocation5 + $0x80] sm:$0xf]  ;;  %v2376_v32 = vld [vmem:[#allocation5 + $0x84] sm:$0xf0]  ;;  %v1964_v41 = vor.u32 %v2408_v23, %v1963_v22  ;;  %v2084_v45 = vor.u32 %v2438_v27, %v2083_v26 }
  0x4e   : > { %981 = vmatpush.bf16.msra.mxu0 %v1788_v5  ;;  %v359_v33 = vld [vmem:[%s2905_s16 + $0x10] sm:$0xff]  ;;  %v366_v34 = vld [vmem:[%s2905_s16 + $0x48] sm:$0xff]  ;;  %v357_v44 = vld [vmem:[%s2905_s16] sm:$0xff]  ;;  %v1832_v46 = vor.u32 %v2373_v28, %v1829_v30  ;;  %v1836_v50 = vor.u32 %v2376_v32, %v1835_v31  ;;  %vm972_vm0 = vcmask 130048   ;;  %s1767_s25 = sshll.u32 %s1753_s6, 1  ;;  %vm1654_vm12 = vcmask 7168  }
  0x4f   : > { %1009 = vmatpush.bf16.msra.mxu2 %v1916_v7  ;;  %v2147_v35 = vld [vmem:[#allocation5 + $0x2f0] sm:$0xf]  ;;  %v2454_v37 = vld [vmem:[#allocation5 + $0x2f4] sm:$0xf0]  ;;  %v2155_v38 = vld [vmem:[#allocation5 + $0x300] sm:$0xf]  ;;  %v2925_v55 = vpack.c.bf16 %v366_v34, %v359_v33 }
  0x50   : > { %1023 = vmatpush.bf16.msra.mxu3 %v1980_v8  ;;  %v2456_v39 = vld [vmem:[#allocation5 + $0x304] sm:$0xf0]  ;;  %v2389_v42 = vld [vmem:[#allocation5 + $0xf4] sm:$0xf]  ;;  %v1893_v43 = vld [vmem:[#allocation5 + $0xf8] sm:$0xf0]  ;;  %v2148_v56 = vor.u32 %v2454_v37, %v2147_v35 }
  0x51   : > { %995 = vmatpush.bf16.msra.mxu1 %v1852_v12  ;;  %v364_v47 = vld [vmem:[%s2905_s16 + $0x38] sm:$0xff]  ;;  %v367_v49 = vld [vmem:[%s2905_s16 + $0x50] sm:$0xff]  ;;  %v2156_v51 = vor.u32 %v2456_v39, %v2155_v38  ;;  %v358_v58 = vld [vmem:[%s2905_s16 + $0x8] sm:$0xff]  ;;  %v1896_v60 = vor.u32 %v2389_v42, %v1893_v43  ;;  %p351_p1 = scmp.lt.s32.totalorder %s1767_s25, 7 }
  0x52   : > { %982 = vmatpush.bf16.msra.mxu0 %v1780_v19  ;;  %v360_v48 = vld [vmem:[%s2905_s16 + $0x18] sm:$0xff]  ;;  %v2075_v52 = vld [vmem:[#allocation5 + $0x260] sm:$0xf]  ;;  %v2371_v54 = vld [vmem:[#allocation5 + $0x64] sm:$0xf]  ;;  %v2929_v61 = vpack.c.bf16 %v364_v47, %v357_v44 }
  0x53   : > { %1010 = vmatpush.bf16.msra.mxu2 %v1908_v24  ;;  %v2436_v53 = vld [vmem:[#allocation5 + $0x264] sm:$0xf0]  ;;  %v1821_v57 = vld [vmem:[#allocation5 + $0x68] sm:$0xf0]  ;;  %v365_v59 = vld [vmem:[%s2905_s16 + $0x40] sm:$0xff]  ;;  %v2931_v0 = vpack.c.bf16 %v367_v49, %v360_v48  ;;  %s3011_s25 = smov (!%p351_p1, %s1767_s25), 7 }
  0x54   : > { %1024 = vmatpush.bf16.msra.mxu3 %v1972_v25  ;;  %v2139_v62 = vld [vmem:[#allocation5 + $0x2e0] sm:$0xf]  ;;  %v2452_v63 = vld [vmem:[#allocation5 + $0x2e4] sm:$0xf0]  ;;  %v2076_v1 = vor.u32 %v2436_v53, %v2075_v52  ;;  %v2387_v2 = vld [vmem:[#allocation5 + $0xe4] sm:$0xf]  ;;  %v1824_v4 = vor.u32 %v2371_v54, %v1821_v57  ;;  %v2933_v5 = vpack.c.bf16 %v365_v59, %v358_v58 }
  0x55   : > { %996 = vmatpush.bf16.msra.mxu1 %v1844_v29  ;;  %v1885_v3 = vld [vmem:[#allocation5 + $0xe8] sm:$0xf0]  ;;  %v2067_v6 = vld [vmem:[#allocation5 + $0x250] sm:$0xf]  ;;  %v2434_v7 = vld [vmem:[#allocation5 + $0x254] sm:$0xf0]  ;;  %v2140_v8 = vor.u32 %v2452_v63, %v2139_v62 }
  0x56   : > { %983 = vmatpush.bf16.msra.mxu0 %v1772_v36  ;;  %v2369_v9 = vld [vmem:[#allocation5 + $0x54] sm:$0xf]  ;;  %v1813_v10 = vld [vmem:[#allocation5 + $0x58] sm:$0xf0]  ;;  %v1888_v11 = vor.u32 %v2387_v2, %v1885_v3  ;;  %v2131_v12 = vld [vmem:[#allocation5 + $0x2d0] sm:$0xf]  ;;  %v2068_v14 = vor.u32 %v2434_v7, %v2067_v6 }
  0x57   : > { %1011 = vmatpush.bf16.msra.mxu2 %v1900_v40  ;;  %v2450_v13 = vld [vmem:[#allocation5 + $0x2d4] sm:$0xf0]  ;;  %v2385_v15 = vld [vmem:[#allocation5 + $0xd4] sm:$0xf]  ;;  %v1877_v16 = vld [vmem:[#allocation5 + $0xd8] sm:$0xf0]  ;;  %v1816_v17 = vor.u32 %v2369_v9, %v1813_v10 }
  0x58   : > { %1025 = vmatpush.bf16.msra.mxu3 %v1964_v41  ;;  %v2059_v18 = vld [vmem:[#allocation5 + $0x240] sm:$0xf]  ;;  %v2432_v19 = vld [vmem:[#allocation5 + $0x244] sm:$0xf0]  ;;  %v2132_v20 = vor.u32 %v2450_v13, %v2131_v12  ;;  %v2367_v21 = vld [vmem:[#allocation5 + $0x44] sm:$0xf]  ;;  %v1880_v23 = vor.u32 %v2385_v15, %v1877_v16 }
  0x59   : > { %997 = vmatpush.bf16.msra.mxu1 %v1836_v50  ;;  %984 = vmatmul.bf16.vlgmr.msra.gmra.mxu0 %v2929_v61  ;;  %v1805_v22 = vld [vmem:[#allocation5 + $0x48] sm:$0xf0]  ;;  %v2123_v24 = vld [vmem:[#allocation5 + $0x2c0] sm:$0xf]  ;;  %v2448_v25 = vld [vmem:[#allocation5 + $0x2c4] sm:$0xf0]  ;;  %v2060_v26 = vor.u32 %v2432_v19, %v2059_v18 }
  0x5a   : > { %1032 = vmatpush.bf16.msrb.mxu0 %v2084_v45  ;;  %1012 = vmatmul.bf16.vlgmr.msra.gmra.mxu2 %v2925_v55  ;;  %v2383_v27 = vld [vmem:[#allocation5 + $0xc4] sm:$0xf]  ;;  %v1869_v28 = vld [vmem:[#allocation5 + $0xc8] sm:$0xf0]  ;;  %v1808_v29 = vor.u32 %v2367_v21, %v1805_v22  ;;  %v2051_v30 = vld [vmem:[#allocation5 + $0x230] sm:$0xf]  ;;  %v2124_v32 = vor.u32 %v2448_v25, %v2123_v24 }
  0x5b   : > { %1067 = vmatpush.bf16.msrb.mxu2 %v2156_v51  ;;  %1026 = vmatmul.bf16.vlgmr.msra.gmra.mxu3 %v2931_v0  ;;  %v2430_v31 = vld [vmem:[#allocation5 + $0x234] sm:$0xf0]  ;;  %v2365_v33 = vld [vmem:[#allocation5 + $0x34] sm:$0xf]  ;;  %v1797_v34 = vld [vmem:[#allocation5 + $0x38] sm:$0xf0]  ;;  %v1872_v36 = vor.u32 %v2383_v27, %v1869_v28 }
  0x5c   : > { %1074 = vmatpush.bf16.msrb.mxu3 %v1832_v46  ;;  %998 = vmatmul.bf16.vlgmr.msra.gmra.mxu1 %v2933_v5  ;;  %v2115_v35 = vld [vmem:[#allocation5 + $0x2b0] sm:$0xf]  ;;  %v2446_v37 = vld [vmem:[#allocation5 + $0x2b4] sm:$0xf0]  ;;  %v2052_v40 = vor.u32 %v2430_v31, %v2051_v30  ;;  %v2381_v41 = vld [vmem:[#allocation5 + $0xb4] sm:$0xf]  ;;  %v1800_v43 = vor.u32 %v2365_v33, %v1797_v34 }
  0x5d   : > { %1046 = vmatpush.bf16.msrb.mxu1 %v2148_v56  ;;  %v363_v38 = vld [vmem:[%s2905_s16 + $0x30] sm:$0xff]  ;;  %v370_v39 = vld [vmem:[%s2905_s16 + $0x68] sm:$0xff]  ;;  %v2116_v46 = vor.u32 %v2446_v37, %v2115_v35  ;;  %v361_v21 = vld [vmem:[%s2905_s16 + $0x20] sm:$0xff]  ;;  %s1768_s26 = sshll.u32 %s3011_s25, 3 }
  0x5e   : > { %1033 = vmatpush.bf16.msrb.mxu0 %v2076_v1  ;;  %v1861_v42 = vld [vmem:[#allocation5 + $0xb8] sm:$0xf0]  ;;  %v2043_v44 = vld [vmem:[#allocation5 + $0x220] sm:$0xf]  ;;  %v2428_v45 = vld [vmem:[#allocation5 + $0x224] sm:$0xf0]  ;;  %v2941_v49 = vpack.c.bf16 %v370_v39, %v363_v38  ;;  %s354_s6 = scalar_lea.vmem %s3000_s7, %s1768_s26 }
  0x5f   : > { %1088 = vmatpush.bf16.msra.mxu2 %v1896_v60  ;;  %v2363_v47 = vld [vmem:[#allocation5 + $0x24] sm:$0xf]  ;;  %v1789_v48 = vld [vmem:[#allocation5 + $0x28] sm:$0xf0]  ;;  %v1864_v50 = vor.u32 %v2381_v41, %v1861_v42  ;;  %v2107_v51 = vld [vmem:[#allocation5 + $0x2a0] sm:$0xf]  ;;  %v2044_v53 = vor.u32 %v2428_v45, %v2043_v44 }
  0x60   : > { %1075 = vmatpush.bf16.msrb.mxu3 %v1824_v4  ;;  %v2444_v52 = vld [vmem:[#allocation5 + $0x2a4] sm:$0xf0]  ;;  %v2379_v54 = vld [vmem:[#allocation5 + $0xa4] sm:$0xf]  ;;  %v1853_v56 = vld [vmem:[#allocation5 + $0xa8] sm:$0xf0]  ;;  %v1792_v57 = vor.u32 %v2363_v47, %v1789_v48 }
  0x61   : > { %1047 = vmatpush.bf16.msrb.mxu1 %v2140_v8  ;;  %v2035_v58 = vld [vmem:[#allocation5 + $0x210] sm:$0xf]  ;;  %v2426_v59 = vld [vmem:[#allocation5 + $0x214] sm:$0xf0]  ;;  %v2361_v60 = vld [vmem:[#allocation5 + $0x14] sm:$0xf]  ;;  %v2108_v62 = vor.u32 %v2444_v52, %v2107_v51  ;;  %v1856_v3 = vor.u32 %v2379_v54, %v1853_v56 }
  0x62   : > { %1034 = vmatpush.bf16.msrb.mxu0 %v2068_v14  ;;  %v1781_v63 = vld [vmem:[#allocation5 + $0x18] sm:$0xf0]  ;;  %v2099_v1 = vld [vmem:[#allocation5 + $0x290] sm:$0xf]  ;;  %v2442_v2 = vld [vmem:[#allocation5 + $0x294] sm:$0xf0]  ;;  %v2036_v8 = vor.u32 %v2426_v59, %v2035_v58 }
  0x63   : > { %1089 = vmatpush.bf16.msra.mxu2 %v1888_v11  ;;  %v2377_v4 = vld [vmem:[#allocation5 + $0x94] sm:$0xf]  ;;  %v1845_v6 = vld [vmem:[#allocation5 + $0x98] sm:$0xf0]  ;;  %v2027_v7 = vld [vmem:[#allocation5 + $0x200] sm:$0xf]  ;;  %v1784_v12 = vor.u32 %v2361_v60, %v1781_v63  ;;  %v2100_v16 = vor.u32 %v2442_v2, %v2099_v1 }
  0x64   : > { %1076 = vmatpush.bf16.msrb.mxu3 %v1816_v17  ;;  %v2424_v9 = vld [vmem:[#allocation5 + $0x204] sm:$0xf0]  ;;  %v2359_v10 = vld [vmem:[#allocation5 + $0x4] sm:$0xf]  ;;  %v1773_v11 = vld [vmem:[#allocation5 + $0x8] sm:$0xf0] }
  0x65   : > { %1048 = vmatpush.bf16.msrb.mxu1 %v2132_v20  ;;  %v2405_v13 = vld [vmem:[#allocation5 + $0x174] sm:$0xf]  ;;  %v1957_v14 = vld [vmem:[#allocation5 + $0x178] sm:$0xf0]  ;;  %v2091_v18 = vld [vmem:[#allocation5 + $0x280] sm:$0xf]  ;;  %v1848_v20 = vor.u32 %v2377_v4, %v1845_v6  ;;  %v2028_v24 = vor.u32 %v2424_v9, %v2027_v7  ;;  %v1776_v28 = vor.u32 %v2359_v10, %v1773_v11 }
  0x66   : > { %1035 = vmatpush.bf16.msrb.mxu0 %v2060_v26  ;;  %v2437_v15 = vld [vmem:[#allocation5 + $0x274] sm:$0xf]  ;;  %v2085_v17 = vld [vmem:[#allocation5 + $0x278] sm:$0xf0]  ;;  %v2440_v19 = vld [vmem:[#allocation5 + $0x284] sm:$0xf0] }
  0x67   : > { %1090 = vmatpush.bf16.msra.mxu2 %v1880_v23  ;;  %v368_v22 = vld [vmem:[%s2905_s16 + $0x58] sm:$0xff]  ;;  %v2375_v23 = vld [vmem:[#allocation5 + $0x84] sm:$0xf]  ;;  %v2421_v26 = vld [vmem:[#allocation5 + $0x1f4] sm:$0xf]  ;;  %v2088_v33 = vor.u32 %v2437_v15, %v2085_v17  ;;  %v2092_v34 = vor.u32 %v2440_v19, %v2091_v18 }
  0x68   : > { %1077 = vmatpush.bf16.msrb.mxu3 %v1808_v29  ;;  %v1837_v25 = vld [vmem:[#allocation5 + $0x88] sm:$0xf0]  ;;  %v2021_v27 = vld [vmem:[#allocation5 + $0x1f8] sm:$0xf0]  ;;  %v1960_v29 = vor.u32 %v2405_v13, %v1957_v14  ;;  %v2453_v30 = vld [vmem:[#allocation5 + $0x2f4] sm:$0xf]  ;;  %v2949_v38 = vpack.c.bf16 %v368_v22, %v361_v21 }
  0x69   : > { %1049 = vmatpush.bf16.msrb.mxu1 %v2124_v32  ;;  %v2149_v31 = vld [vmem:[#allocation5 + $0x2f8] sm:$0xf0]  ;;  %v369_v35 = vld [vmem:[%s2905_s16 + $0x60] sm:$0xff]  ;;  %v1949_v37 = vld [vmem:[#allocation5 + $0x168] sm:$0xf0]  ;;  %v1840_v39 = vor.u32 %v2375_v23, %v1837_v25  ;;  %v2024_v42 = vor.u32 %v2421_v26, %v2021_v27 }
  0x6a   : > { %1036 = vmatpush.bf16.msrb.mxu0 %v2052_v40  ;;  %2161 = vmatmul.msk.bf16.vlgmr.msrb.gmra.mxu2 %vm972_vm0, %v2941_v49  ;;  %v362_v32 = vld [vmem:[%s2905_s16 + $0x28] sm:$0xff]  ;;  %v2435_v40 = vld [vmem:[#allocation5 + $0x264] sm:$0xf]  ;;  %v2401_v52 = vld [vmem:[#allocation5 + $0x154] sm:$0xf] }
  0x6b   : > { %1091 = vmatpush.bf16.msra.mxu2 %v1872_v36  ;;  %v2403_v36 = vld [vmem:[#allocation5 + $0x164] sm:$0xf]  ;;  %v2077_v41 = vld [vmem:[#allocation5 + $0x268] sm:$0xf0]  ;;  %v2951_v45 = vpack.c.bf16 %v369_v35, %v362_v32  ;;  %v2433_v54 = vld [vmem:[#allocation5 + $0x254] sm:$0xf] }
  0x6c   : > { %1078 = vmatpush.bf16.msrb.mxu3 %v1800_v43  ;;  %v2152_v43 = vor.u32 %v2453_v30, %v2149_v31  ;;  %v2419_v44 = vld [vmem:[#allocation5 + $0x1e4] sm:$0xf]  ;;  %v2013_v47 = vld [vmem:[#allocation5 + $0x1e8] sm:$0xf0]  ;;  %v2080_v51 = vor.u32 %v2435_v40, %v2077_v41  ;;  %v2069_v56 = vld [vmem:[#allocation5 + $0x258] sm:$0xf0] }
  0x6d   : > { %1050 = vmatpush.bf16.msrb.mxu1 %v2116_v46  ;;  %v1952_v46 = vor.u32 %v2403_v36, %v1949_v37  ;;  %v2451_v48 = vld [vmem:[#allocation5 + $0x2e4] sm:$0xf]  ;;  %v2417_v59 = vld [vmem:[#allocation5 + $0x1d4] sm:$0xf]  ;;  %v2133_v1 = vld [vmem:[#allocation5 + $0x2d8] sm:$0xf0]  ;;  %v2072_v2 = vor.u32 %v2433_v54, %v2069_v56 }
  0x6e   : > { %1037 = vmatpush.bf16.msrb.mxu0 %v2044_v53  ;;  %v1941_v53 = vld [vmem:[#allocation5 + $0x158] sm:$0xf0]  ;;  %v2449_v63 = vld [vmem:[#allocation5 + $0x2d4] sm:$0xf]  ;;  %v1933_v4 = vld [vmem:[#allocation5 + $0x148] sm:$0xf0] }
  0x6f   : > { %1092 = vmatpush.bf16.msra.mxu2 %v1864_v50  ;;  %v2141_v50 = vld [vmem:[#allocation5 + $0x2e8] sm:$0xf0]  ;;  %v1944_v60 = vor.u32 %v2401_v52, %v1941_v53  ;;  %v2431_v6 = vld [vmem:[#allocation5 + $0x244] sm:$0xf]  ;;  %v2136_v9 = vor.u32 %v2449_v63, %v2133_v1  ;;  %v1925_v17 = vld [vmem:[#allocation5 + $0x138] sm:$0xf0] }
  0x70   : > { %1079 = vmatpush.bf16.msrb.mxu3 %v1792_v57  ;;  %v2016_v57 = vor.u32 %v2419_v44, %v2013_v47  ;;  %v2144_v58 = vor.u32 %v2451_v48, %v2141_v50  ;;  %v2061_v7 = vld [vmem:[#allocation5 + $0x248] sm:$0xf0]  ;;  %v2415_v10 = vld [vmem:[#allocation5 + $0x1c4] sm:$0xf]  ;;  %v2429_v18 = vld [vmem:[#allocation5 + $0x234] sm:$0xf] }
  0x71   : > { %1051 = vmatpush.bf16.msrb.mxu1 %v2108_v62  ;;  %v2005_v62 = vld [vmem:[#allocation5 + $0x1d8] sm:$0xf0]  ;;  %v1997_v11 = vld [vmem:[#allocation5 + $0x1c8] sm:$0xf0]  ;;  %v2447_v13 = vld [vmem:[#allocation5 + $0x2c4] sm:$0xf]  ;;  %v2064_v15 = vor.u32 %v2431_v6, %v2061_v7 }
  0x72   : > { %1038 = vmatpush.bf16.msrb.mxu0 %v2036_v8  ;;  %v2008_v8 = vor.u32 %v2417_v59, %v2005_v62  ;;  %v2125_v14 = vld [vmem:[#allocation5 + $0x2c8] sm:$0xf0]  ;;  %v2000_v19 = vor.u32 %v2415_v10, %v1997_v11  ;;  %v1989_v22 = vld [vmem:[#allocation5 + $0x1b8] sm:$0xf0]  ;;  %v2445_v23 = vld [vmem:[#allocation5 + $0x2b4] sm:$0xf] }
  0x73   : > { %1093 = vmatpush.bf16.msra.mxu2 %v1856_v3  ;;  %v2399_v3 = vld [vmem:[#allocation5 + $0x144] sm:$0xf]  ;;  %v1917_v27 = vld [vmem:[#allocation5 + $0x128] sm:$0xf0]  ;;  %v1909_v40 = vld [vmem:[#allocation5 + $0x118] sm:$0xf0] }
  0x74   : > { %1080 = vmatpush.bf16.msrb.mxu3 %v1784_v12  ;;  %v1936_v12 = vor.u32 %v2399_v3, %v1933_v4  ;;  %v2395_v26 = vld [vmem:[#allocation5 + $0x124] sm:$0xf]  ;;  %v2109_v36 = vld [vmem:[#allocation5 + $0x2a8] sm:$0xf0]  ;;  %v2425_v41 = vld [vmem:[#allocation5 + $0x214] sm:$0xf] }
  0x75   : > { %1052 = vmatpush.bf16.msrb.mxu1 %v2100_v16  ;;  %v2397_v16 = vld [vmem:[#allocation5 + $0x134] sm:$0xf]  ;;  %v2411_v32 = vld [vmem:[#allocation5 + $0x1a4] sm:$0xf]  ;;  %v1973_v48 = vld [vmem:[#allocation5 + $0x198] sm:$0xf0] }
  0x76   : > { %1039 = vmatpush.bf16.msrb.mxu0 %v2028_v24  ;;  %v1928_v21 = vor.u32 %v2397_v16, %v1925_v17  ;;  %v2117_v24 = vld [vmem:[#allocation5 + $0x2b8] sm:$0xf0]  ;;  %v2443_v35 = vld [vmem:[#allocation5 + $0x2a4] sm:$0xf]  ;;  %v2441_v50 = vld [vmem:[#allocation5 + $0x294] sm:$0xf] }
  0x77   : > { %1094 = vmatpush.bf16.msra.mxu2 %v1848_v20  ;;  %v2413_v20 = vld [vmem:[#allocation5 + $0x1b4] sm:$0xf]  ;;  %v2120_v31 = vor.u32 %v2445_v23, %v2117_v24  ;;  %v2112_v44 = vor.u32 %v2443_v35, %v2109_v36  ;;  %v2391_v53 = vld [vmem:[#allocation5 + $0x104] sm:$0xf]  ;;  %v1901_v54 = vld [vmem:[#allocation5 + $0x108] sm:$0xf0] }
  0x78   : > { %1081 = vmatpush.bf16.msrb.mxu3 %v1776_v28  ;;  %v2427_v28 = vld [vmem:[#allocation5 + $0x224] sm:$0xf]  ;;  %v1992_v30 = vor.u32 %v2413_v20, %v1989_v22  ;;  %v2157_v59 = vld [vmem:[#allocation5 + $0x308] sm:$0xf0]  ;;  %v1904_v63 = vor.u32 %v2391_v53, %v1901_v54  ;;  %v2221_v10 = vld [vmem:[#allocation7 + $0x70] sm:$0xf] }
  0x79   : > { %1053 = vmatpush.bf16.msrb.mxu1 %v2092_v34  ;;  %1040 = vmatmul.bf16.vlgmr.msrb.gmra.mxu0 %v2949_v38  ;;  %v1981_v34 = vld [vmem:[#allocation5 + $0x1a8] sm:$0xf0]  ;;  %v2423_v56 = vld [vmem:[#allocation5 + $0x204] sm:$0xf]  ;;  %v2472_v11 = vld [vmem:[#allocation7 + $0x74] sm:$0xf0] }
  0x7a   : > { %1102 = vmatpush.bf16.msra.mxu0 %v1960_v29  ;;  %v2045_v29 = vld [vmem:[#allocation5 + $0x228] sm:$0xf0]  ;;  %v2407_v1 = vld [vmem:[#allocation5 + $0x184] sm:$0xf]  ;;  %v2470_v16 = vld [vmem:[#allocation7 + $0x64] sm:$0xf0] }
  0x7b   : > { %1095 = vmatpush.bf16.msra.mxu2 %v1840_v39  ;;  %1082 = vmatmul.bf16.vlgmr.msrb.gmra.mxu3 %v2929_v61  ;;  %v2128_v61 = vor.u32 %v2447_v13, %v2125_v14  ;;  %v2048_v37 = vor.u32 %v2427_v28, %v2045_v29  ;;  %v2393_v39 = vld [vmem:[#allocation5 + $0x114] sm:$0xf]  ;;  %v2439_v4 = vld [vmem:[#allocation5 + $0x284] sm:$0xf]  ;;  %v2093_v6 = vld [vmem:[#allocation5 + $0x288] sm:$0xf0]  ;;  %v2222_v13 = vor.u32 %v2472_v11, %v2221_v10 }
  0x7c   : > { %1130 = vmatpush.bf16.msra.mxu3 %v2088_v33  ;;  %1054 = vmatmul.bf16.vlgmr.msrb.gmra.mxu1 %v2951_v45  ;;  %v1920_v33 = vor.u32 %v2395_v26, %v1917_v27  ;;  %v1912_v47 = vor.u32 %v2393_v39, %v1909_v40  ;;  %v2223_v14 = vld [vmem:[#allocation7 + $0x78] sm:$0xf0]  ;;  %v2466_v22 = vld [vmem:[#allocation7 + $0x44] sm:$0xf0]  ;;  %v2465_v23 = vld [vmem:[#allocation7 + $0x44] sm:$0xf] }
  0x7d   : > { %1116 = vmatpush.bf16.msra.mxu1 %v2024_v42  ;;  %v2037_v42 = vld [vmem:[#allocation5 + $0x218] sm:$0xf0]  ;;  %v2189_v27 = vld [vmem:[#allocation7 + $0x30] sm:$0xf]  ;;  %v2464_v28 = vld [vmem:[#allocation7 + $0x34] sm:$0xf0] }
  0x7e   : > { %1103 = vmatpush.bf16.msra.mxu0 %v1952_v46  ;;  %1096 = vmatmul.bf16.vlgmr.msra.gmra.mxu2 %v2933_v5  ;;  %v2053_v5 = vld [vmem:[#allocation5 + $0x238] sm:$0xf0]  ;;  %v2409_v46 = vld [vmem:[#allocation5 + $0x194] sm:$0xf]  ;;  %v2040_v52 = vor.u32 %v2425_v41, %v2037_v42  ;;  %v2463_v29 = vld [vmem:[#allocation7 + $0x34] sm:$0xf] }
  0x7f   : > { %1144 = vmatpush.bf16.msrb.mxu2 %v2152_v43  ;;  %v2056_v25 = vor.u32 %v2429_v18, %v2053_v5  ;;  %v1984_v43 = vor.u32 %v2411_v32, %v1981_v34  ;;  %v2469_v18 = vld [vmem:[#allocation7 + $0x64] sm:$0xf]  ;;  %v2462_v34 = vld [vmem:[#allocation7 + $0x24] sm:$0xf0]  ;;  %v2966_v40 = vld [vmem:[%s2995_s2] sm:$0x3] }
  0x80   : > { %1131 = vmatpush.bf16.msra.mxu3 %v2080_v51  ;;  %v2101_v51 = vld [vmem:[#allocation5 + $0x298] sm:$0xf0]  ;;  %v2461_v35 = vld [vmem:[#allocation7 + $0x24] sm:$0xf]  ;;  %v2173_v41 = vld [vmem:[#allocation7 + $0x10] sm:$0xf] }
  0x81   : > { %1117 = vmatpush.bf16.msra.mxu1 %v2016_v57  ;;  %v2029_v57 = vld [vmem:[#allocation5 + $0x208] sm:$0xf0]  ;;  %v2104_v62 = vor.u32 %v2441_v50, %v2101_v51  ;;  %v2460_v42 = vld [vmem:[#allocation7 + $0x14] sm:$0xf0]  ;;  %v2458_v53 = vld [vmem:[#allocation7 + $0x4] sm:$0xf0] }
  0x82   : > { %1104 = vmatpush.bf16.msra.mxu0 %v1944_v60  ;;  %v1976_v60 = vor.u32 %v2409_v46, %v1973_v48  ;;  %v2032_v3 = vor.u32 %v2423_v56, %v2029_v57  ;;  %v2175_v46 = vld [vmem:[#allocation7 + $0x18] sm:$0xf0]  ;;  %v478_v48 = vperm.slane %v2966_v40, 0  ;;  %v2457_v54 = vld [vmem:[#allocation7 + $0x4] sm:$0xf] }
  0x83   : > { %1145 = vmatpush.bf16.msrb.mxu2 %v2144_v58  ;;  %v2455_v58 = vld [vmem:[#allocation5 + $0x304] sm:$0xf]  ;;  %v2287_v11 = vld [vmem:[#allocation7 + $0xf8] sm:$0xf0] }
  0x84   : > { %1132 = vmatpush.bf16.msra.mxu3 %v2072_v2  ;;  %v1965_v2 = vld [vmem:[#allocation5 + $0x188] sm:$0xf0]  ;;  %v2160_v7 = vor.u32 %v2455_v58, %v2157_v59  ;;  %v2167_v58 = vld [vmem:[#allocation7 + $0x8] sm:$0xf0] }
  0x85   : > { %1118 = vmatpush.bf16.msra.mxu1 %v2008_v8  ;;  %v1968_v8 = vor.u32 %v2407_v1, %v1965_v2  ;;  %v2170_v59 = vor.u32 %v2457_v54, %v2167_v58  ;;  %v2478_v54 = vld [vmem:[#allocation7 + $0xa4] sm:$0xf0] }
  0x86   : > { %1105 = vmatpush.bf16.msra.mxu0 %v1936_v12  ;;  %v2471_v12 = vld [vmem:[#allocation7 + $0x74] sm:$0xf] }
  0x87   : > { %1146 = vmatpush.bf16.msrb.mxu2 %v2136_v9  ;;  %v2096_v9 = vor.u32 %v2439_v4, %v2093_v6  ;;  %v2226_v17 = vor.u32 %v2471_v12, %v2223_v14 }
  0x88   : > { %1133 = vmatpush.bf16.msra.mxu3 %v2064_v15  ;;  %v2213_v15 = vld [vmem:[#allocation7 + $0x60] sm:$0xf] }
  0x89   : > { %1119 = vmatpush.bf16.msra.mxu1 %v2000_v19  ;;  %v2468_v19 = vld [vmem:[#allocation7 + $0x54] sm:$0xf0] }
  0x8a   : > { %1106 = vmatpush.bf16.msra.mxu0 %v1928_v21  ;;  %v2197_v21 = vld [vmem:[#allocation7 + $0x40] sm:$0xf] }
  0x8b   : > { %1147 = vmatpush.bf16.msrb.mxu2 %v2128_v61  ;;  %v2207_v61 = vld [vmem:[#allocation7 + $0x58] sm:$0xf0]  ;;  %v2198_v24 = vor.u32 %v2466_v22, %v2197_v21  ;;  %v2484_v21 = vld [vmem:[#allocation7 + $0xd4] sm:$0xf0]  ;;  %v2483_v22 = vld [vmem:[#allocation7 + $0xd4] sm:$0xf] }
  0x8c   : > { %1134 = vmatpush.bf16.msra.mxu3 %v2056_v25  ;;  %v2199_v25 = vld [vmem:[#allocation7 + $0x48] sm:$0xf0] }
  0x8d   : > { %1120 = vmatpush.bf16.msra.mxu1 %v1992_v30  ;;  %v2202_v26 = vor.u32 %v2465_v23, %v2199_v25  ;;  %v2190_v30 = vor.u32 %v2464_v28, %v2189_v27  ;;  %v2271_v25 = vld [vmem:[#allocation7 + $0xd8] sm:$0xf0] }
  0x8e   : > { %1107 = vmatpush.bf16.msra.mxu0 %v1920_v33  ;;  %v2181_v33 = vld [vmem:[#allocation7 + $0x20] sm:$0xf] }
  0x8f   : > { %1148 = vmatpush.bf16.msrb.mxu2 %v2120_v31  ;;  %v2191_v31 = vld [vmem:[#allocation7 + $0x38] sm:$0xf0]  ;;  %v2182_v36 = vor.u32 %v2462_v34, %v2181_v33 }
  0x90   : > { %1135 = vmatpush.bf16.msra.mxu3 %v2048_v37  ;;  %v2194_v32 = vor.u32 %v2463_v29, %v2191_v31  ;;  %v2183_v37 = vld [vmem:[#allocation7 + $0x28] sm:$0xf0]  ;;  %v2261_v29 = vld [vmem:[#allocation7 + $0xc0] sm:$0xf]  ;;  %v2481_v31 = vld [vmem:[#allocation7 + $0xc4] sm:$0xf] }
  0x91   : > { %1121 = vmatpush.bf16.msra.mxu1 %v1984_v43  ;;  %v2186_v39 = vor.u32 %v2461_v35, %v2183_v37  ;;  %v2459_v43 = vld [vmem:[#allocation7 + $0x14] sm:$0xf]  ;;  %v2263_v35 = vld [vmem:[#allocation7 + $0xc8] sm:$0xf0] }
  0x92   : > { %1108 = vmatpush.bf16.msra.mxu0 %v1912_v47  ;;  %v2178_v47 = vor.u32 %v2459_v43, %v2175_v46  ;;  %v2480_v43 = vld [vmem:[#allocation7 + $0xb4] sm:$0xf0] }
  0x93   : > { %1149 = vmatpush.bf16.msrb.mxu2 %v2112_v44  ;;  %v2174_v44 = vor.u32 %v2460_v42, %v2173_v41  ;;  %v2253_v42 = vld [vmem:[#allocation7 + $0xb0] sm:$0xf] }
  0x94   : > { %1136 = vmatpush.bf16.msra.mxu3 %v2040_v52  ;;  %v2165_v52 = vld [vmem:[#allocation7] sm:$0xf] }
  0x95   : > { %1122 = vmatpush.bf16.msra.mxu1 %v1976_v60  ;;  %v2166_v57 = vor.u32 %v2458_v53, %v2165_v52  ;;  %v2245_v53 = vld [vmem:[#allocation7 + $0xa0] sm:$0xf] }
  0x96   : > { %1109 = vmatpush.bf16.msra.mxu0 %v1904_v63 }
  0x97   : > { %1150 = vmatpush.bf16.msrb.mxu2 %v2104_v62 }
  0x98   : > { %1137 = vmatpush.bf16.msra.mxu3 %v2032_v3 }
  0x99   : > { %1123 = vmatpush.bf16.msra.mxu1 %v1968_v8  ;;  %1110 = vmatmul.bf16.vlgmr.msra.gmra.mxu0 %v2925_v55  ;;  %v2215_v55 = vld [vmem:[#allocation7 + $0x68] sm:$0xf0]  ;;  %v2488_v8 = vld [vmem:[#allocation7 + $0xf4] sm:$0xf0] }
  0x9a   : > { %1165 = vmatpush.bf16.msrb.mxu0 %v2160_v7  ;;  %v2218_v5 = vor.u32 %v2469_v18, %v2215_v55  ;;  %v2285_v7 = vld [vmem:[#allocation7 + $0xf0] sm:$0xf]  ;;  %v2486_v18 = vld [vmem:[#allocation7 + $0xe4] sm:$0xf0]  ;;  %v2485_v55 = vld [vmem:[#allocation7 + $0xe4] sm:$0xf] }
  0x9b   : > { %1138 = vmatmul.bf16.vlgmr.msra.gmra.mxu3 %v2949_v38  ;;  %1151 = vmatpush.bf16.msrb.mxu2 %v2096_v9  ;;  %v2214_v38 = vor.u32 %v2470_v16, %v2213_v15  ;;  %v2487_v9 = vld [vmem:[#allocation7 + $0xf4] sm:$0xf]  ;;  %v2286_v10 = vor.u32 %v2488_v8, %v2285_v7  ;;  %v2239_v8 = vld [vmem:[#allocation7 + $0x98] sm:$0xf0] }
  0x9c   : > { %1124 = vmatmul.bf16.vlgmr.msra.gmra.mxu1 %v2931_v0  ;;  %v2205_v0 = vld [vmem:[#allocation7 + $0x50] sm:$0xf]  ;;  %v2290_v12 = vor.u32 %v2487_v9, %v2287_v11  ;;  %v2474_v11 = vld [vmem:[#allocation7 + $0x84] sm:$0xf0] }
  0x9d   : > { %1384 = vmatpush.bf16.msrb.mxu1 %v2222_v13  ;;  %1398 = vmatpush.bf16.msrb.mxu3 %v2286_v10  ;;  %v2229_v10 = vld [vmem:[#allocation7 + $0x80] sm:$0xf] }
  0x9e   : > { %1152 = vmatmul.bf16.vlgmr.msrb.gmra.mxu2 %v2951_v45  ;;  %1412 = vmatpush.bf16.msra.mxu0 %v2226_v17  ;;  %v2467_v45 = vld [vmem:[#allocation7 + $0x54] sm:$0xf]  ;;  %v2277_v17 = vld [vmem:[#allocation7 + $0xe0] sm:$0xf] }
  0x9f   : > { %v2210_v20 = vor.u32 %v2467_v45, %v2207_v61  ;;  %1426 = vmatpush.bf16.msra.mxu2 %v2290_v12  ;;  %v2473_v12 = vld [vmem:[#allocation7 + $0x84] sm:$0xf] }
  0xa1   : > { %1385 = vmatpush.bf16.msrb.mxu1 %v2214_v38 }
  0xa2   : > { %1413 = vmatpush.bf16.msra.mxu0 %v2218_v5  ;;  %v2278_v5 = vor.u32 %v2486_v18, %v2277_v17 }
  0xa4   : > { %1399 = vmatpush.bf16.msrb.mxu3 %v2278_v5 }
  0xa6   : > { %1414 = vmatpush.bf16.msra.mxu0 %v2210_v20  ;;  %v2269_v20 = vld [vmem:[#allocation7 + $0xd0] sm:$0xf] }
  0xa9   : > { %2162 = vmatmul.msk.bf16.vlgmr.msrb.gmra.mxu0 %vm972_vm0, %v2941_v49  ;;  %v2206_v49 = vor.u32 %v2468_v19, %v2205_v0  ;;  %v2279_v0 = vld [vmem:[#allocation7 + $0xe8] sm:$0xf0] }
  0xaa   : > { %1415 = vmatpush.bf16.msra.mxu0 %v2202_v26  ;;  %v2282_v45 = vor.u32 %v2485_v55, %v2279_v0  ;;  %v2274_v26 = vor.u32 %v2483_v22, %v2271_v25 }
  0xab   : > { %1386 = vmatpush.bf16.msrb.mxu1 %v2206_v49 }
  0xac   : > { %1427 = vmatpush.bf16.msra.mxu2 %v2282_v45 }
  0xae   : > { %1416 = vmatpush.bf16.msra.mxu0 %v2194_v32 }
  0xaf   : > { %1387 = vmatpush.bf16.msrb.mxu1 %v2198_v24  ;;  %v2270_v24 = vor.u32 %v2484_v21, %v2269_v20 }
  0xb0   : > { %1428 = vmatpush.bf16.msra.mxu2 %v2274_v26 }
  0xb1   : > { %1400 = vmatpush.bf16.msrb.mxu3 %v2270_v24 }
  0xb2   : > { %1417 = vmatpush.bf16.msra.mxu0 %v2186_v39  ;;  %v2266_v39 = vor.u32 %v2481_v31, %v2263_v35 }
  0xb3   : > { %1388 = vmatpush.bf16.msrb.mxu1 %v2190_v30  ;;  %v2482_v30 = vld [vmem:[#allocation7 + $0xc4] sm:$0xf0] }
  0xb4   : > { %v2262_v34 = vor.u32 %v2482_v30, %v2261_v29  ;;  %1429 = vmatpush.bf16.msra.mxu2 %v2266_v39 }
  0xb6   : > { %1418 = vmatpush.bf16.msra.mxu0 %v2178_v47  ;;  %1401 = vmatpush.bf16.msrb.mxu3 %v2262_v34 }
  0xb7   : > { %1389 = vmatpush.bf16.msrb.mxu1 %v2182_v36 }
  0xba   : > { %1419 = vmatpush.bf16.msra.mxu0 %v2170_v59  ;;  %v2246_v59 = vor.u32 %v2478_v54, %v2245_v53  ;;  %v2500_v53 = vld [vmem:[#allocation8 + $0x58] sm:$0xff]  ;;  %v2491_v54 = vld [vmem:[#allocation8 + $0x10] sm:$0xff] }
  0xbb   : > { %1390 = vmatpush.bf16.msrb.mxu1 %v2174_v44  ;;  %v2479_v44 = vld [vmem:[#allocation7 + $0xb4] sm:$0xf] }
  0xbf   : > { %1391 = vmatpush.bf16.msrb.mxu1 %v2166_v57 }
  0xd6   : > { %v985_v50 = vpop.f32.mrf.mxu0 }
  0xd7   : > { %v986_v60 = vadd.f32 %v985_v50, %v478_v48  ;;  %v2255_v50 = vld [vmem:[#allocation7 + $0xb8] sm:$0xf0] }
  0xd9   : > { %v999_v56 = vpop.f32.mrf.mxu1 }
  0xda   : > { %v1000_v62 = vadd.f32 %v999_v56, %v986_v60  ;;  %v2477_v56 = vld [vmem:[#allocation7 + $0xa4] sm:$0xf]  ;;  %v2247_v60 = vld [vmem:[#allocation7 + $0xa8] sm:$0xf0] }
  0xdd   : > { %v1013_v51 = vpop.f32.mrf.mxu2 }
  0xde   : > { %v987_v63 = vpop.f32.mrf.mxu0  ;;  %v1027_v2 = vpop.f32.mrf.mxu3  ;;  %v1014_v4 = vadd.f32 %v1013_v51, %v1000_v62  ;;  %v2258_v51 = vor.u32 %v2479_v44, %v2255_v50  ;;  %v2495_v44 = vld [vmem:[#allocation8 + $0x30] sm:$0xff]  ;;  %v2493_v50 = vld [vmem:[#allocation8 + $0x20] sm:$0xff] }
  0xdf   : > { %v988_v6 = vadd.f32 %v987_v63, %v478_v48  ;;  %v2254_v48 = vor.u32 %v2480_v43, %v2253_v42  ;;  %v2496_v42 = vld [vmem:[#allocation8 + $0x38] sm:$0xff] }
  0xe0   : > { %v1028_v13 = vadd.f32 %v1027_v2, %v1014_v4  ;;  %1430 = vmatpush.bf16.msra.mxu2 %v2258_v51  ;;  %v2237_v2 = vld [vmem:[#allocation7 + $0x90] sm:$0xf]  ;;  %v2475_v4 = vld [vmem:[#allocation7 + $0x94] sm:$0xf]  ;;  %v2504_v43 = vld [vmem:[#allocation8 + $0x78] sm:$0xff]  ;;  %1582 = vmatpush.bf16.msra.mxu1 %v2496_v42 }
  0xe1   : > { %v1001_v3 = vpop.f32.mrf.mxu1  ;;  %1402 = vmatpush.bf16.msrb.mxu3 %v2254_v48  ;;  %v2242_v9 = vor.u32 %v2475_v4, %v2239_v8  ;;  %v2502_v48 = vld [vmem:[#allocation8 + $0x68] sm:$0xff]  ;;  %v2501_v51 = vld [vmem:[#allocation8 + $0x60] sm:$0xff] }
  0xe2   : > { %v1002_v14 = vadd.f32 %v1001_v3, %v988_v6  ;;  %v2476_v3 = vld [vmem:[#allocation7 + $0x94] sm:$0xf0] }
  0xe3   : > { %v2238_v7 = vor.u32 %v2476_v3, %v2237_v2 }
  0xe4   : > { %1583 = vmatpush.bf16.msra.mxu1 %v2495_v44 }
  0xe5   : > { %v1015_v1 = vpop.f32.mrf.mxu2  ;;  %1403 = vmatpush.bf16.msrb.mxu3 %v2246_v59  ;;  %v2489_v59 = vld [vmem:[#allocation8] sm:$0xff] }
  0xe6   : > { %v1016_v61 = vadd.f32 %v1015_v1, %v1002_v14  ;;  %v1029_v49 = vpop.f32.mrf.mxu3  ;;  %v2250_v1 = vor.u32 %v2477_v56, %v2247_v60  ;;  %v2231_v14 = vld [vmem:[#allocation7 + $0x88] sm:$0xf0]  ;;  %v2499_v56 = vld [vmem:[#allocation8 + $0x50] sm:$0xff]  ;;  %v2497_v60 = vld [vmem:[#allocation8 + $0x40] sm:$0xff] }
  0xe8   : > { %v1030_v27 = vadd.f32 %v1029_v49, %v1016_v61  ;;  %1431 = vmatpush.bf16.msra.mxu2 %v2250_v1  ;;  %v1218_v1 = vld [vmem:[%s2997_s4] sm:$0x3] }
  0xe9   : > { %1404 = vmatpush.bf16.msrb.mxu3 %v2238_v7  ;;  %v1220_v2 = vperm.slane %v1218_v1, 0  ;;  %v1221_v3 = vperm.slane %v1218_v1, 1 }
  0xec   : > { %1432 = vmatpush.bf16.msra.mxu2 %v2242_v9 }
  0xed   : > { %v1069_v16 = vpop.f32.mrf.mxu2 }
  0xf5   : > { %v1071_v37 = vpop.f32.mrf.mxu2 }
  0xf6   : > { %v1041_v15 = vpop.f32.mrf.mxu0 }
  0xf7   : > { %v1042_v38 = vadd.f32 %v1041_v15, %v1028_v13  ;;  %v2230_v13 = vor.u32 %v2474_v11, %v2229_v10  ;;  %v479_v15 = vperm.slane %v2966_v40, 1 }
  0xf9   : > { %v1055_v19 = vpop.f32.mrf.mxu1  ;;  %1405 = vmatpush.bf16.msrb.mxu3 %v2230_v13 }
  0xfa   : > { %v1056_v23 = vadd.f32 %v1055_v19, %v1042_v38 }
  0xfc   : > { %v1070_v32 = vadd.f32 %v1069_v16, %v1056_v23  ;;  %v2234_v16 = vor.u32 %v2473_v12, %v2231_v14 }
  0xfd   : > { %1596 = vmatpush.bf16.msra.mxu3 %v2504_v43 }
  0xfe   : > { %v1043_v28 = vpop.f32.mrf.mxu0  ;;  %v1176_v46 = vmul.f32 0.2, %v1070_v32  ;;  %vm1172_vm1 = vcmp.gt.f32.partialorder %v1070_v32, 0.0  ;;  %v1083_v63 = vpop.f32.mrf.mxu3  ;;  %1433 = vmatpush.bf16.msra.mxu2 %v2234_v16 }
  0xff   : > { %v1044_v33 = vadd.f32 %v1043_v28, %v1030_v27  ;;  %v1084_v55 = vadd.f32 %v1083_v63, %v479_v15 }
 0x100   : > { %v1180_v57 = vsel %vm1172_vm1, %v1070_v32, %v1176_v46  ;;  %v2503_v46 = vld [vmem:[#allocation8 + $0x70] sm:$0xff] }
 0x101   : > { %v1057_v36 = vpop.f32.mrf.mxu1  ;;  %v1097_v6 = vpop.f32.mrf.mxu2  ;;  %1597 = vmatpush.bf16.msra.mxu3 %v2503_v46 }
 0x102   : > { %v1058_v41 = vadd.f32 %v1057_v36, %v1044_v33  ;;  %v1098_v0 = vadd.f32 %v1097_v6, %v1084_v55 }
 0x104   : > { %v1072_v47 = vadd.f32 %v1071_v37, %v1058_v41 }
 0x105   : > { %1598 = vmatpush.bf16.msra.mxu3 %v2502_v48 }
 0x106   : > { %vm1174_vm2 = vcmp.gt.f32.partialorder %v1072_v47, 0.0  ;;  %v1178_v52 = vmul.f32 0.2, %v1072_v47  ;;  %v1085_v17 = vpop.f32.mrf.mxu3 }
 0x107   : > { %v1086_v19 = vadd.f32 %v1085_v17, %v479_v15 }
 0x108   : > { %v1182_v58 = vsel %vm1174_vm2, %v1072_v47, %v1178_v52  ;;  %v2494_v47 = vld [vmem:[#allocation8 + $0x28] sm:$0xff]  ;;  %v2492_v52 = vld [vmem:[#allocation8 + $0x18] sm:$0xff] }
 0x109   : > { %v1184_v62 = vpack.c.bf16 %v1182_v58, %v1180_v57  ;;  %v1099_v38 = vpop.f32.mrf.mxu2  ;;  %1584 = vmatpush.bf16.msra.mxu1 %v2494_v47  ;;  %1599 = vmatpush.bf16.msra.mxu3 %v2501_v51  ;;  %v2490_v57 = vld [vmem:[#allocation8 + $0x8] sm:$0xff] }
 0x10a   : > { %v1100_v21 = vadd.f32 %v1099_v38, %v1086_v19  ;;  %v2498_v58 = vld [vmem:[#allocation8 + $0x48] sm:$0xff] }
 0x10b   : > { %1392 = vmatmul.bf16.vlgmr.msrb.gmra.mxu1 %v1184_v62  ;;  %1420 = vmatmul.bf16.vlgmr.msra.gmra.mxu0 %v1184_v62 }
 0x10d   : > { %1585 = vmatpush.bf16.msra.mxu1 %v2493_v50  ;;  %1600 = vmatpush.bf16.msra.mxu3 %v2500_v53 }
 0x111   : > { %1586 = vmatpush.bf16.msra.mxu1 %v2492_v52  ;;  %1601 = vmatpush.bf16.msra.mxu3 %v2499_v56 }
 0x115   : > { %1587 = vmatpush.bf16.msra.mxu1 %v2491_v54  ;;  %1602 = vmatpush.bf16.msra.mxu3 %v2498_v58 }
 0x116   : > { %v1111_v18 = vpop.f32.mrf.mxu0 }
 0x117   : > { %v1112_v49 = vadd.f32 %v1111_v18, %v1098_v0 }
 0x119   : > { %v1125_v5 = vpop.f32.mrf.mxu1  ;;  %1588 = vmatpush.bf16.msra.mxu1 %v2490_v57  ;;  %1603 = vmatpush.bf16.msra.mxu3 %v2497_v60 }
 0x11a   : > { %v1126_v22 = vadd.f32 %v1125_v5, %v1112_v49 }
 0x11d   : > { %1589 = vmatpush.bf16.msra.mxu1 %v2489_v59 }
 0x11e   : > { %v1139_v45 = vpop.f32.mrf.mxu3  ;;  %v1113_v61 = vpop.f32.mrf.mxu0 }
 0x11f   : > { %v1114_v23 = vadd.f32 %v1113_v61, %v1100_v21  ;;  %v1140_v25 = vadd.f32 %v1139_v45, %v1126_v22 }
 0x121   : > { %v1153_v20 = vpop.f32.mrf.mxu2  ;;  %v1127_v24 = vpop.f32.mrf.mxu1 }
 0x122   : > { %v1128_v27 = vadd.f32 %v1127_v24, %v1114_v23  ;;  %v1154_v28 = vadd.f32 %v1153_v20, %v1140_v25  ;;  %v2584_v23 = vld [vmem:[#allocation2] ss:$0 sm:$0xff] }
 0x126   : > { %v1141_v40 = vpop.f32.mrf.mxu3  ;;  %v1167_v26 = vpop.f32.mrf.mxu0 }
 0x127   : > { %v1142_v29 = vadd.f32 %v1141_v40, %v1128_v27  ;;  %v1168_v31 = vadd.f32 %v1167_v26, %v1154_v28 }
 0x129   : > { %v1155_v30 = vpop.f32.mrf.mxu2  ;;  %v1177_v34 = vmul.f32 0.2, %v1168_v31  ;;  %vm1173_vm3 = vcmp.gt.f32.partialorder %v1168_v31, 0.0 }
 0x12a   : > { %v1156_v32 = vadd.f32 %v1155_v30, %v1142_v29 }
 0x12b   : > { %v1181_v37 = vsel %vm1173_vm3, %v1168_v31, %v1177_v34 }
 0x12e   : > { %v1169_v33 = vpop.f32.mrf.mxu0 }
 0x12f   : > { %v1170_v35 = vadd.f32 %v1169_v33, %v1156_v32 }
 0x131   : > { %vm1175_vm4 = vcmp.gt.f32.partialorder %v1170_v35, 0.0  ;;  %v1179_v36 = vmul.f32 0.2, %v1170_v35 }
 0x133   : > { %v1183_v39 = vsel %vm1175_vm4, %v1170_v35, %v1179_v36 }
 0x134   : > { %v1185_v41 = vpack.c.bf16 %v1183_v39, %v1181_v37 }
 0x136   : > { %1406 = vmatmul.bf16.vlgmr.msrb.gmra.mxu3 %v1185_v41  ;;  %1434 = vmatmul.bf16.vlgmr.msra.gmra.mxu2 %v1185_v41 }
 0x188   : > { %v1393_v62 = vpop.f32.mrf.mxu1  ;;  %v1421_v63 = vpop.f32.mrf.mxu0 }
 0x189   : > { %v1394_v7 = vadd.f32 %v1393_v62, %v1220_v2  ;;  %v1422_v8 = vadd.f32 %v1421_v63, %v1221_v3 }
 0x190   : > { %v1395_v9 = vpop.f32.mrf.mxu1  ;;  %v1423_v10 = vpop.f32.mrf.mxu0 }
 0x191   : > { %v1396_v13 = vadd.f32 %v1395_v9, %v1220_v2  ;;  %v1424_v14 = vadd.f32 %v1423_v10, %v1221_v3 }
 0x1b9   : > { %v1407_v4 = vpop.f32.mrf.mxu3  ;;  %v1435_v6 = vpop.f32.mrf.mxu2 }
 0x1ba   : > { %v1408_v11 = vadd.f32 %v1407_v4, %v1394_v7  ;;  %v1436_v12 = vadd.f32 %v1435_v6, %v1422_v8 }
 0x1bc   : > { %v1444_v17 = vmul.f32 0.2, %v1408_v11  ;;  %v1445_v18 = vmul.f32 0.2, %v1436_v12  ;;  %vm1440_vm5 = vcmp.gt.f32.partialorder %v1408_v11, 0.0  ;;  %vm1441_vm6 = vcmp.gt.f32.partialorder %v1436_v12, 0.0 }
 0x1be   : > { %v1448_v19 = vsel %vm1440_vm5, %v1408_v11, %v1444_v17  ;;  %v1449_v45 = vsel %vm1441_vm6, %v1436_v12, %v1445_v18 }
 0x1c1   : > { %v1409_v15 = vpop.f32.mrf.mxu3  ;;  %v1437_v16 = vpop.f32.mrf.mxu2 }
 0x1c2   : > { %v1410_v55 = vadd.f32 %v1409_v15, %v1396_v13  ;;  %v1438_v38 = vadd.f32 %v1437_v16, %v1424_v14 }
 0x1c4   : > { %vm1442_vm7 = vcmp.gt.f32.partialorder %v1410_v55, 0.0  ;;  %v1446_v5 = vmul.f32 0.2, %v1410_v55  ;;  %vm1443_vm8 = vcmp.gt.f32.partialorder %v1438_v38, 0.0  ;;  %v1447_v0 = vmul.f32 0.2, %v1438_v38 }
 0x1c6   : > { %v1450_v61 = vsel %vm1442_vm7, %v1410_v55, %v1446_v5  ;;  %v1451_v49 = vsel %vm1443_vm8, %v1438_v38, %v1447_v0 }
 0x1c7   : > { %v1452_v20 = vpack.c.bf16 %v1450_v61, %v1448_v19  ;;  %v1453_v21 = vpack.c.bf16 %v1451_v49, %v1449_v45 }
 0x1c9   : > { %1590 = vmatmul.bf16.vlgmr.msra.gmra.mxu1 %v1452_v20  ;;  %1604 = vmatmul.bf16.vlgmr.msra.gmra.mxu3 %v1453_v21 }
 0x246   : > { %v1591_v22 = vpop.f32.mrf.mxu1 }
 0x24c   : > { %v1605_v24 = vpop.f32.mrf.mxu3 }
 0x24d   : > { %v1606_v25 = vadd.f32 %v1605_v24, %v1591_v22 }
 0x24e   : > { %v1593_v27 = vpop.f32.mrf.mxu1 }
 0x24f   : > { %v1614_v40 = vadd.f32 %v2584_v23, %v1606_v25 }
 0x251   : > { %v2355_v26 = vmul.f32 -1.442695, %v1614_v40 }
 0x253   : > { %2585 = vpow2.f32 %v2355_v26 }
 0x254   : > { %v1607_v28 = vpop.f32.mrf.mxu3 }
 0x255   : > { %v1608_v29 = vadd.f32 %v1607_v28, %v1593_v27 }
 0x257   : > { %v1615_v30 = vadd.f32 %v2584_v23, %v1608_v29 }
 0x259   : > { %v2586_v31 = vpop.eup %2585  ;;  %v2356_v32 = vmul.f32 -1.442695, %v1615_v30 }
 0x25a   : > { %v1622_v33 = vadd.f32 1.0, %v2586_v31 }
 0x25b   : > { %2587 = vpow2.f32 %v2356_v32 }
 0x25c   : > { %2589 = vrcp.f32 %v1622_v33  ;;  %v1635_v41 = vand.u32 2147483648, %v1622_v33  ;;  %v1633_v43 = vand.u32 2147483647, %v1622_v33  ;;  %vm1629_vm10 = vweird.f32 %v1622_v33 }
 0x25e   : > { %v1636_v47 = vor.u32 1.1754944e-38, %v1635_v41  ;;  %vm1634_vm13 = vcmp.eq.f32.partialorder %v1633_v43, 8.507059e+37 }
 0x261   : > { %v2588_v34 = vpop.eup %2587 }
 0x262   : > { %v2590_v35 = vpop.eup %2589  ;;  %v1623_v36 = vadd.f32 1.0, %v2588_v34 }
 0x263   : > { %v1625_v37 = vmul.f32 %v2590_v35, %v1622_v33  ;;  %vm1630_vm9 = vweird.f32 %v2590_v35 }
 0x264   : > { %2591 = vrcp.f32 %v1623_v36  ;;  %vm1631_vm11 = vmor %vm1629_vm10, %vm1630_vm9  ;;  %v1650_v53 = vand.u32 2147483648, %v1623_v36  ;;  %v1648_v56 = vand.u32 2147483647, %v1623_v36  ;;  %vm1644_vm15 = vweird.f32 %v1623_v36 }
 0x265   : > { %v1626_v39 = vsub.f32 1.0, %v1625_v37 }
 0x266   : > { %v1651_v58 = vor.u32 1.1754944e-38, %v1650_v53  ;;  %vm1649_vm1 = vcmp.eq.f32.partialorder %v1648_v56, 8.507059e+37 }
 0x267   : > { %v1627_v42 = vmul.f32 %v2590_v35, %v1626_v39 }
 0x269   : > { %v1628_v44 = vadd.f32 %v2590_v35, %v1627_v42 }
 0x26a   : > { %v2592_v46 = vpop.eup %2591 }
 0x26b   : > { %v1632_v48 = vsel %vm1631_vm11, %v2590_v35, %v1628_v44  ;;  %v1640_v50 = vmul.f32 %v2592_v46, %v1623_v36  ;;  %vm1645_vm14 = vweird.f32 %v2592_v46 }
 0x26c   : > { %v1637_v51 = vsel %vm1634_vm13, %v1636_v47, %v1632_v48  ;;  %vm1646_vm0 = vmor %vm1644_vm15, %vm1645_vm14 }
 0x26d   : > { %1655 = vst.msk [vmem:[%s354_s6] sm:$0xff] %vm1654_vm12, %v1637_v51  ;;  %v1641_v52 = vsub.f32 1.0, %v1640_v50 }
 0x26f   : > { %v1642_v54 = vmul.f32 %v2592_v46, %v1641_v52 }
 0x271   : > { %v1643_v57 = vadd.f32 %v2592_v46, %v1642_v54 }
 0x273   : > { %v1647_v59 = vsel %vm1646_vm0, %v2592_v46, %v1643_v57 }
 0x274   : > { %v1652_v60 = vsel %vm1649_vm1, %v1651_v58, %v1647_v59 }
 0x275   : > { %1656 = vst.msk [vmem:[%s354_s6 + $0x8] sm:$0xff] %vm1654_vm12, %v1652_v60 }
 0x276 PF: > { %p21_p4 = scmp.ge.s32.totalorder %s2871_s13, 6   ;;  %s3006_s26 = smov %s2747_s27 }
 0x277   : > { %s3007_s27 = smov %s2751_s28  ;;  %s3008_s28 = smov %s2881_s17 }
 0x278   : > { %s3009_s29 = smov %s2871_s13  ;;  %23 = sbr.rel (!%p21_p4) target bundleno = 8 (0x8), region = 100 }
 0x27d   :  { %1679 = vsyncpa [#allocation4], 1 }
 0x27e   :  { %1681 = vsyncpa [#allocation4 + $0x1], 1 }
 0x27f   :  { %1682 = vsyncpa [#allocation6], 1 }
 0x280   :  { %1683 = vsyncpa [#allocation9], 1 }

</bundles_post_ra>
